<compile_context>
chip_gen: v7x
topology: tpu7x:2x2x1
jax: 0.10.0
libtpu: 0.0.40
codegen_flags: <defaults>
</compile_context>

<pallas_src>
import functools

import jax
import jax.numpy as jnp
from jax import lax
from jax.experimental import pallas as pl
from jax.experimental.pallas import tpu as pltpu


def _round_up(a, b):
    return (a + b - 1) // b * b


def _dist_linear_kernel(x_ref, v_ref, g_ref, o_ref, s_ref, *,
                        scale_factor, matmul_dtype):
    # ---- per-class scale, computed once per weight tile (batch axis is inner,
    # so cache it in VMEM scratch and reuse for every batch tile) -------------
    @pl.when(pl.program_id(1) == 0)
    def _():
        v = v_ref[...].astype(jnp.float32)                         # (tn, indim)
        # Lane-dense row-norm^2 via an MXU ones-row contraction -> (1, tn);
        # avoids a cross-lane XLU reduce + sublane->lane relayout.
        ones_row = jnp.ones((1, v.shape[1]), jnp.float32)
        vsq_row = lax.dot_general(
            ones_row, v * v,
            dimension_numbers=(((1,), (1,)), ((), ())),
            preferred_element_type=jnp.float32)                    # (1, tn)
        # max() guards zero-padded classes (padded g is 0, so s stays 0).
        inv_vnorm = lax.rsqrt(jnp.maximum(vsq_row, 1e-30))
        g = g_ref[...].astype(jnp.float32)                         # (1, tn)
        s_ref[...] = (scale_factor * g) * inv_vnorm

    # ---- input row normalization (eps matches PyTorch: added to the norm) ---
    x = x_ref[...].astype(jnp.float32)                             # (tm, indim)
    xsq = jnp.sum(x * x, axis=1, keepdims=True)                    # (tm, 1)
    x_inv = pl.reciprocal(jnp.sqrt(xsq) + 1e-5, approx=True)       # EUP
    x_n = (x * x_inv).astype(matmul_dtype)

    # ---- NT matmul on raw v (no normalized-weight copy, no transpose) -------
    cos = lax.dot_general(
        x_n, v_ref[...].astype(matmul_dtype),
        dimension_numbers=(((1,), (1,)), ((), ())),                # contract indim
        preferred_element_type=jnp.float32)                        # (tm, tn)

    # ---- column-wise scale fold (g / ||v|| and scale_factor) ----------------
    o_ref[...] = (cos * s_ref[...]).astype(o_ref.dtype)


def dist_linear(x, weight_v, weight_g, *, tm=128, tn=128, matmul_dtype=None):
    """Pallas implementation of distLinear.forward.

    x:        (B, indim)
    weight_v: (outdim, indim)   -- WeightNorm 'v' parameter
    weight_g: (outdim, 1)       -- WeightNorm 'g' parameter
    matmul_dtype: dtype for the MXU contraction (e.g. jnp.bfloat16 on v6e/v7x);
                  norms / scales stay in f32, accumulation is f32.
    returns:  (B, outdim)
    """
    B, indim = x.shape
    outdim, indim_v = weight_v.shape
    assert indim_v == indim
    scale_factor = 2.0 if outdim <= 200 else 10.0
    if matmul_dtype is None:
        matmul_dtype = x.dtype

    # Batch tile: multiple of 8 sublanes. Class tile: multiple of 128 lanes so
    # output stores are lane-dense (no masked vst).
    tm_eff = min(tm, _round_up(B, 8))
    B_pad = _round_up(B, tm_eff)
    tn_eff = min(tn, _round_up(outdim, 128))
    out_pad = _round_up(outdim, tn_eff)

    x_p = x if B_pad == B else jnp.pad(x, ((0, B_pad - B), (0, 0)))
    v_p = (weight_v if out_pad == outdim
           else jnp.pad(weight_v, ((0, out_pad - outdim), (0, 0))))
    g_row = weight_g.reshape(1, outdim)                 # lane-dense g
    g_p = (g_row if out_pad == outdim
           else jnp.pad(g_row, ((0, 0), (0, out_pad - outdim))))

    grid = (out_pad // tn_eff, B_pad // tm_eff)         # (class tiles, batch tiles)

    kernel = functools.partial(_dist_linear_kernel,
                               scale_factor=scale_factor,
                               matmul_dtype=matmul_dtype)

    out = pl.pallas_call(
        kernel,
        out_shape=jax.ShapeDtypeStruct((B_pad, out_pad), x.dtype),
        grid_spec=pltpu.PrefetchScalarGridSpec(
            num_scalar_prefetch=0,
            grid=grid,
            in_specs=[
                pl.BlockSpec((tm_eff, indim), lambda o, b: (b, 0)),   # x
                pl.BlockSpec((tn_eff, indim), lambda o, b: (o, 0)),   # v
                pl.BlockSpec((1, tn_eff), lambda o, b: (0, o)),       # g (lane-dense)
            ],
            out_specs=pl.BlockSpec((tm_eff, tn_eff), lambda o, b: (b, o)),
            scratch_shapes=[pltpu.VMEM((1, tn_eff), jnp.float32)],    # cached s
        ),
        compiler_params=pltpu.CompilerParams(
            # class-tile axis shards across TensorCores (v7x megacore); batch
            # axis must stay sequential because s_ref is cached across it.
            dimension_semantics=("parallel", "arbitrary"),
            # Fits every generation's scoped VMEM (v7x physical is 64 MiB).
            vmem_limit_bytes=32 * 1024 * 1024,
        ),
    )(x_p, v_p, g_p)

    return out[:B, :outdim]


def reference_dist_linear(x, weight_v, weight_g):
    """Pure-JAX reference of the PyTorch forward (for verification)."""
    outdim = weight_v.shape[0]
    scale_factor = 2.0 if outdim <= 200 else 10.0
    x_norm = jnp.linalg.norm(x, axis=1, keepdims=True)
    x_n = x / (x_norm + 1e-5)
    v_norm = jnp.linalg.norm(weight_v, axis=1, keepdims=True)
    w = weight_g * weight_v / v_norm
    return scale_factor * (x_n @ w.T)


if __name__ == "__main__":
    # Small shapes consistent with the module: indim=32 features, outdim=16 classes.
    B, indim, outdim = 8, 32, 16

    key = jax.random.PRNGKey(0)
    kx, kv = jax.random.split(key)

    x = jax.random.normal(kx, (B, indim), dtype=jnp.float32)

    # nn.Linear-style weight, then WeightNorm.apply initializes g = ||v|| per row.
    bound = 1.0 / jnp.sqrt(indim)
    weight_v = jax.random.uniform(kv, (outdim, indim), jnp.float32, -bound, bound)
    weight_g = jnp.linalg.norm(weight_v, axis=1, keepdims=True)  # (outdim, 1)

    ref = reference_dist_linear(x, weight_v, weight_g)

    # f32 MXU path (exact path; tolerance covers the approx EUP reciprocal).
    out = jax.block_until_ready(dist_linear(x, weight_v, weight_g))
    assert out.shape == (B, outdim)
    assert jnp.allclose(out, ref, atol=5e-3, rtol=5e-3), "f32 path mismatch vs reference"

    # bf16 MXU fast path for v6e/v7x (f32 accumulation), looser tolerance.
    out_bf16 = jax.block_until_ready(
        dist_linear(x, weight_v, weight_g, matmul_dtype=jnp.bfloat16))
    assert jnp.allclose(out_bf16, ref, atol=5e-2, rtol=5e-2), "bf16 path mismatch vs reference"

    print("KERNEL_OK")
</pallas_src>

<mosaic_0001>
module attributes {stable_mosaic.version = 11 : i64} {
  func.func @_dist_linear_kernel(%arg0: i32, %arg1: i32, %arg2: memref<8x32xf32, #tpu.memory_space<vmem>>, %arg3: memref<128x32xf32, #tpu.memory_space<vmem>>, %arg4: memref<1x128xf32, #tpu.memory_space<vmem>>, %arg5: memref<8x128xf32, #tpu.memory_space<vmem>>, %arg6: memref<1x128xf32, #tpu.memory_space<vmem>>) attributes {dimension_semantics = [#tpu.dimension_semantics<parallel>, #tpu.dimension_semantics<arbitrary>], iteration_bounds = array<i64: 1, 1>, scalar_prefetch = 0 : i64, scratch_operands = 1 : i64, tpu.core_type = #tpu.core_type<tc>, window_params = [{transform_indices = @transform_0, window_bounds = array<i64: 8, 32>}, {transform_indices = @transform_1, window_bounds = array<i64: 128, 32>}, {transform_indices = @transform_2, window_bounds = array<i64: 1, 128>}, {transform_indices = @transform_3, window_bounds = array<i64: 8, 128>}]} {
    %c0_i32 = arith.constant 0 : i32
    %0 = arith.cmpi eq, %arg1, %c0_i32 : i32
    %1 = arith.extui %0 : i1 to i32
    %c0_i32_0 = arith.constant 0 : i32
    %2 = arith.cmpi ne, %1, %c0_i32_0 : i32
    scf.if %2 {
      %c0_10 = arith.constant 0 : index
      %c0_11 = arith.constant 0 : index
      %19 = vector.load %arg3[%c0_10, %c0_11] : memref<128x32xf32, #tpu.memory_space<vmem>>, vector<128x32xf32>
      %cst_12 = arith.constant 1.000000e+00 : f32
      %20 = vector.broadcast %cst_12 : f32 to vector<1x32xf32>
      %21 = arith.mulf %19, %19 : vector<128x32xf32>
      %cst_13 = arith.constant dense<0.000000e+00> : vector<1x128xf32>
      %22 = tpu.matmul %20, %21, %cst_13 {dimension_numbers = #tpu.dot_dimension_numbers<[1], [1], [0], [0], [0, 0, 1, 0], [], []>} : vector<1x32xf32>, vector<128x32xf32>, vector<1x128xf32> -> vector<1x128xf32>
      %cst_14 = arith.constant 1.000000e-30 : f32
      %23 = vector.broadcast %cst_14 : f32 to vector<1x128xf32>
      %24 = arith.maximumf %22, %23 : vector<1x128xf32>
      %25 = math.rsqrt %24 : vector<1x128xf32>
      %c0_15 = arith.constant 0 : index
      %c0_16 = arith.constant 0 : index
      %26 = vector.load %arg4[%c0_15, %c0_16] : memref<1x128xf32, #tpu.memory_space<vmem>>, vector<1x128xf32>
      %cst_17 = arith.constant 2.000000e+00 : f32
      %27 = vector.broadcast %cst_17 : f32 to vector<1x128xf32>
      %28 = arith.mulf %27, %26 : vector<1x128xf32>
      %29 = arith.mulf %28, %25 : vector<1x128xf32>
      %c0_18 = arith.constant 0 : index
      %c0_19 = arith.constant 0 : index
      %30 = vector.load %arg6[%c0_18, %c0_19] : memref<1x128xf32, #tpu.memory_space<vmem>>, vector<1x128xf32>
      tpu.vector_store %arg6[%c0_18, %c0_19], %29 {strides = array<i32>} : memref<1x128xf32, #tpu.memory_space<vmem>>, vector<1x128xf32>,
    } else {
    }
    %c0 = arith.constant 0 : index
    %c0_1 = arith.constant 0 : index
    %3 = vector.load %arg2[%c0, %c0_1] : memref<8x32xf32, #tpu.memory_space<vmem>>, vector<8x32xf32>
    %4 = arith.mulf %3, %3 : vector<8x32xf32>
    %cst = arith.constant dense<0.000000e+00> : vector<8xf32>
    %5 = vector.multi_reduction <add>, %4, %cst [1] : vector<8x32xf32> to vector<8xf32>
    %6 = vector.shape_cast %5 : vector<8xf32> to vector<8x1xf32>
    %7 = math.sqrt %6 : vector<8x1xf32>
    %cst_2 = arith.constant 9.99999974E-6 : f32
    %8 = vector.broadcast %cst_2 : f32 to vector<8x1xf32>
    %9 = arith.addf %7, %8 : vector<8x1xf32>
    %10 = tpu.reciprocal %9 {approx = true} : vector<8x1xf32> -> vector<8x1xf32>
    %11 = vector.broadcast %10 : vector<8x1xf32> to vector<8x32xf32>
    %12 = arith.mulf %3, %11 : vector<8x32xf32>
    %c0_3 = arith.constant 0 : index
    %c0_4 = arith.constant 0 : index
    %13 = vector.load %arg3[%c0_3, %c0_4] : memref<128x32xf32, #tpu.memory_space<vmem>>, vector<128x32xf32>
    %cst_5 = arith.constant dense<0.000000e+00> : vector<8x128xf32>
    %14 = tpu.matmul %12, %13, %cst_5 {dimension_numbers = #tpu.dot_dimension_numbers<[1], [1], [0], [0], [0, 0, 1, 0], [], []>} : vector<8x32xf32>, vector<128x32xf32>, vector<8x128xf32> -> vector<8x128xf32>
    %c0_6 = arith.constant 0 : index
    %c0_7 = arith.constant 0 : index
    %15 = vector.load %arg6[%c0_6, %c0_7] : memref<1x128xf32, #tpu.memory_space<vmem>>, vector<1x128xf32>
    %16 = vector.broadcast %15 : vector<1x128xf32> to vector<8x128xf32>
    %17 = arith.mulf %14, %16 : vector<8x128xf32>
    %c0_8 = arith.constant 0 : index
    %c0_9 = arith.constant 0 : index
    %18 = vector.load %arg5[%c0_8, %c0_9] : memref<8x128xf32, #tpu.memory_space<vmem>>, vector<8x128xf32>
    tpu.vector_store %arg5[%c0_8, %c0_9], %17 {strides = array<i32>} : memref<8x128xf32, #tpu.memory_space<vmem>>, vector<8x128xf32>,
    return
  }
  func.func @transform_0(%arg0: i32, %arg1: i32) -> (i32, i32) {
    %c0_i32 = arith.constant 0 : i32
    %c0_i32_0 = arith.constant 0 : i32
    return %arg1, %c0_i32 : i32, i32
  }
  func.func @transform_1(%arg0: i32, %arg1: i32) -> (i32, i32) {
    %c0_i32 = arith.constant 0 : i32
    %c0_i32_0 = arith.constant 0 : i32
    return %arg0, %c0_i32 : i32, i32
  }
  func.func @transform_2(%arg0: i32, %arg1: i32) -> (i32, i32) {
    %c0_i32 = arith.constant 0 : i32
    %c0_i32_0 = arith.constant 0 : i32
    return %c0_i32, %arg0 : i32, i32
  }
  func.func @transform_3(%arg0: i32, %arg1: i32) -> (i32, i32) {
    %c0_i32 = arith.constant 0 : i32
    return %arg1, %arg0 : i32, i32
  }
}

</mosaic_0001>

<bundles_post_ra>
// kernel: tpu_custom_call.1
= control target key start
LH: loop header
LB: loop body
LE: loop exit
PB: predicated region body
PF: predicated region fallthrough
CT: control target
= control target key end

     0   :  { %vm51_vm0 = vcmask 261120   ;;  %v593_v4 = vmov 0.0|0.0   ;;  %s746_s0 = inlined_call_operand.vmem [shape: f32[8,32], index: 0, kind: input, shape index: {}]   ;;  %s747_s1 = inlined_call_operand.vmem [shape: f32[128,32], index: 1, kind: input, shape index: {}]   ;;  %s748_s2 = inlined_call_operand.vmem [shape: f32[1,128], index: 2, kind: input, shape index: {}]   ;;  %s749_s3 = inlined_call_operand.hbm [shape: f32[8,128], index: 3, kind: output, shape index: {}]  }
   0x1   :  { %v621_v0 = vld [vmem:[%s746_s0] sm:$0xff]  ;;  %v20_v2 = vld [vmem:[%s747_s1 + $0x8] sm:$0xff]  ;;  %494 = vmatprep.subr.bf16.mxu0 %v593_v4  ;;  %526 = vmatprep.subr.bf16.mxu1 %v593_v4  ;;  %vm635_vm1 = vmpackc.low %vm51_vm0, %vm51_vm0 }
   0x2   :  { %v19_v1 = vld [vmem:[%s747_s1] sm:$0xff]  ;;  %v180_v3 = vmul.f32 %v621_v0, %v621_v0  ;;  %v36_v6 = vmul.f32 %v20_v2, %v20_v2  ;;  %v21_v8 = vld [vmem:[%s747_s1 + $0x10] sm:$0xff]  ;;  %v22_v9 = vld [vmem:[%s747_s1 + $0x18] sm:$0xff] }
   0x3   :  { %v35_v5 = vmul.f32 %v19_v1, %v19_v1  ;;  %v527_v10 = vpack.c.bf16 %v20_v2, %v19_v1  ;;  %v37_v13 = vmul.f32 %v21_v8, %v21_v8  ;;  %v38_v14 = vmul.f32 %v22_v9, %v22_v9 }
   0x4   :  { %v182_v11 = vsel %vm51_vm0, %v180_v3, 0.0 }
   0x5   :  { %v495_v12 = vpack.c.bf16 %v36_v6, %v35_v5  ;;  %183 = vadd.xlane.f32.xlu0 %v182_v11  ;;  %529 = vmatpush3.bf16.xpose.msk.msra.mxu1 %vm635_vm1, %v527_v10 }
   0x6   :  { %530 = vmatprep.subr.bf16.mxu1 %v593_v4 }
   0x7   :  { %497 = vmatpush3.bf16.xpose.msk.msra.mxu0 %vm635_vm1, %v495_v12 }
   0x8   :  { %498 = vmatprep.subr.bf16.mxu0 %v593_v4 }
   0x9   :  { %8 = vsyncpa [#allocation4], 0  ;;  %v531_v15 = vpack.c.bf16 %v22_v9, %v21_v8  ;;  %v499_v16 = vpack.c.bf16 %v38_v14, %v37_v13  ;;  %v23_v17 = vld [vmem:[%s747_s1 + $0x20] sm:$0xff]  ;;  %v24_v18 = vld [vmem:[%s747_s1 + $0x28] sm:$0xff]  ;;  %vm594_vm2 = vmmov 0   ;;  %v595_v27 = vmov 0.0  }
   0xa   :  { %v39_v19 = vmul.f32 %v23_v17, %v23_v17  ;;  %v40_v20 = vmul.f32 %v24_v18, %v24_v18  ;;  %v535_v21 = vpack.c.bf16 %v24_v18, %v23_v17  ;;  %v25_v23 = vld [vmem:[%s747_s1 + $0x30] sm:$0xff]  ;;  %v26_v24 = vld [vmem:[%s747_s1 + $0x38] sm:$0xff]  ;;  %456 = vmatprep.mubr.msk.f32.mxu0 %vm594_vm2, %v595_v27  ;;  %491 = vmatprep.mubr.msk.f32.mxu1 %vm594_vm2, %v595_v27  ;;  %v27_v30 = vld [vmem:[%s747_s1 + $0x40] sm:$0xff]  ;;  %v596_v54 = vmov 1.0   ;;  %s597_s18 = smov [#allocation3]  }
   0xb   :  { %v41_v25 = vmul.f32 %v25_v23, %v25_v23  ;;  %v42_v26 = vmul.f32 %v26_v24, %v26_v24  ;;  %v539_v28 = vpack.c.bf16 %v26_v24, %v25_v23  ;;  %v28_v31 = vld [vmem:[%s747_s1 + $0x48] sm:$0xff]  ;;  %v43_v32 = vmul.f32 %v27_v30, %v27_v30  ;;  %v29_v36 = vld [vmem:[%s747_s1 + $0x50] sm:$0xff]  ;;  %v30_v37 = vld [vmem:[%s747_s1 + $0x58] sm:$0xff]  ;;  %s347_s19 = sshll.u32 %s597_s18, 4  ;;  %s348_s19 = int_to_ptr.vmem [resolvable:$true] %s347_s19 }
   0xc   :  { %v503_v22 = vpack.c.bf16 %v40_v20, %v39_v19  ;;  %v44_v33 = vmul.f32 %v28_v31, %v28_v31  ;;  %v543_v34 = vpack.c.bf16 %v28_v31, %v27_v30  ;;  %v45_v38 = vmul.f32 %v29_v36, %v29_v36  ;;  %v31_v42 = vld [vmem:[%s747_s1 + $0x60] sm:$0xff]  ;;  %v32_v43 = vld [vmem:[%s747_s1 + $0x68] sm:$0xff]  ;;  %v33_v48 = vld [vmem:[%s747_s1 + $0x70] sm:$0xff]  ;;  %s569_s20 = scalar_lea.vmem %s348_s19, 128  ;;  %p574_p1 = scmp.lt.s32.totalorder %s348_s19, %s348_s19 }
   0xd   :  { %533 = vmatpush3.bf16.xpose.msk.msra.mxu1 %vm635_vm1, %v531_v15  ;;  %v507_v29 = vpack.c.bf16 %v42_v26, %v41_v25  ;;  %v46_v39 = vmul.f32 %v30_v37, %v30_v37  ;;  %v547_v40 = vpack.c.bf16 %v30_v37, %v29_v36  ;;  %v47_v44 = vmul.f32 %v31_v42, %v31_v42  ;;  %v34_v49 = vld [vmem:[%s747_s1 + $0x78] sm:$0xff]  ;;  %p570_p0 = scmp.ne.s32.totalorder %s348_s19, %s569_s20  ;;  %p575_p2 = scmp.lt.s32.totalorder %s569_s20, %s569_s20 }
   0xe   :  { %534 = vmatprep.subr.bf16.mxu1 %v593_v4  ;;  %v511_v35 = vpack.c.bf16 %v44_v33, %v43_v32  ;;  %v48_v45 = vmul.f32 %v32_v43, %v32_v43  ;;  %v551_v46 = vpack.c.bf16 %v32_v43, %v31_v42  ;;  %v49_v50 = vmul.f32 %v33_v48, %v33_v48 }
   0xf   :  { %501 = vmatpush3.bf16.xpose.msk.msra.mxu0 %vm635_vm1, %v499_v16  ;;  %v515_v41 = vpack.c.bf16 %v46_v39, %v45_v38  ;;  %v50_v51 = vmul.f32 %v34_v49, %v34_v49  ;;  %v555_v52 = vpack.c.bf16 %v34_v49, %v33_v48  ;;  %p576_p3 = por %p575_p2, %p574_p1 }
  0x10   :  { %502 = vmatprep.subr.bf16.mxu0 %v593_v4  ;;  %v519_v47 = vpack.c.bf16 %v48_v45, %v47_v44 }
  0x11   :  { %v523_v53 = vpack.c.bf16 %v50_v51, %v49_v50  ;;  %p577_p4 = pnand %p576_p3, %p570_p0 }
  0x15   :  { %537 = vmatpush3.bf16.xpose.msk.msra.mxu1 %vm635_vm1, %v535_v21 }
  0x16   :  { %538 = vmatprep.subr.bf16.mxu1 %v593_v4 }
  0x17   :  { %505 = vmatpush3.bf16.xpose.msk.msra.mxu0 %vm635_vm1, %v503_v22 }
  0x18   :  { %506 = vmatprep.subr.bf16.mxu0 %v593_v4 }
  0x1d   :  { %541 = vmatpush3.bf16.xpose.msk.msra.mxu1 %vm635_vm1, %v539_v28 }
  0x1e   :  { %542 = vmatprep.subr.bf16.mxu1 %v593_v4 }
  0x1f   :  { %509 = vmatpush3.bf16.xpose.msk.msra.mxu0 %vm635_vm1, %v507_v29 }
  0x20   :  { %510 = vmatprep.subr.bf16.mxu0 %v593_v4 }
  0x25   :  { %545 = vmatpush3.bf16.xpose.msk.msra.mxu1 %vm635_vm1, %v543_v34 }
  0x26   :  { %546 = vmatprep.subr.bf16.mxu1 %v593_v4 }
  0x27   :  { %513 = vmatpush3.bf16.xpose.msk.msra.mxu0 %vm635_vm1, %v511_v35 }
  0x28   :  { %514 = vmatprep.subr.bf16.mxu0 %v593_v4 }
  0x2d   :  { %549 = vmatpush3.bf16.xpose.msk.msra.mxu1 %vm635_vm1, %v547_v40 }
  0x2e   :  { %550 = vmatprep.subr.bf16.mxu1 %v593_v4 }
  0x2f   :  { %517 = vmatpush3.bf16.xpose.msk.msra.mxu0 %vm635_vm1, %v515_v41 }
  0x30   :  { %518 = vmatprep.subr.bf16.mxu0 %v593_v4 }
  0x35   :  { %553 = vmatpush3.bf16.xpose.msk.msra.mxu1 %vm635_vm1, %v551_v46 }
  0x36   :  { %554 = vmatprep.subr.bf16.mxu1 %v593_v4 }
  0x37   :  { %521 = vmatpush3.bf16.xpose.msk.msra.mxu0 %vm635_vm1, %v519_v47 }
  0x38   :  { %522 = vmatprep.subr.bf16.mxu0 %v593_v4  ;;  %v175_v4 = vld [vmem:[%s748_s2] sm:$0x1] }
  0x39   :  { %v176_v5 = vmul.f32 2.0, %v175_v4 }
  0x3d   :  { %557 = vmatpush3.bf16.xpose.msk.msra.mxu1 %vm635_vm1, %v555_v52 }
  0x3f   :  { %525 = vmatpush3.bf16.xpose.msk.msra.mxu0 %vm635_vm1, %v523_v53 }
  0x46   :  { %457 = vmatmul.mubr.msk.f32.vlgmr.msra.gmra.mrb[0].mxu0 %vm51_vm0, %v596_v54 }
  0x92   :  { %v184_v55 = vpop.xlane.xlu0 %183 }
  0x93   :  { %563 = vrsqrt.f32 %v184_v55  ;;  %vm187_vm3 = vcmp.eq.f32.partialorder %v184_v55, inf  ;;  %v190_v58 = vand.u32 2147483648, %v184_v55  ;;  %vm189_vm4 = vcmp.eq.f32.partialorder %v184_v55, 0.0 }
  0x9d   :  { %v564_v56 = vpop.eup %563 }
  0x9e   :  { %v186_v57 = vmul.f32 %v564_v56, %v184_v55 }
  0xa0   :  { %v188_v59 = vsel %vm187_vm3, %v184_v55, %v186_v57 }
  0xa1   :  { %v191_v60 = vsel %vm189_vm4, %v190_v58, %v188_v59 }
  0xa2   :  { %v192_v61 = vadd.f32 1e-05, %v191_v60 }
  0xa4   :  { %565 = vrcp.f32 %v192_v61 }
  0xae   :  { %v566_v62 = vpop.eup %565 }
  0xaf   :  { %v194_v63 = vmul.f32 %v566_v62, %v621_v0 }
  0xb1   :  { %492 = vmatmul.mubr.msk.f32.vlgmr.msra.gmra.mrb[0].mxu1 %vm51_vm0, %v194_v63 }
 0x119   :  { %v169_v1 = vpop.f32.mrb[0].mxu0 }
 0x11a   :  { %v173_v2 = vmax.f32 %v169_v1, 1e-30  ;;  %v458_v3 = vpop.f32.mrb[1].mxu0 }
 0x11c   :  { %567 = vrsqrt.f32 %v173_v2 }
 0x126   :  { %v568_v6 = vpop.eup %567 }
 0x127   :  { %v177_v7 = vmul.f32 %v568_v6, %v176_v5 }
 0x129   :  { %178 = vst [vmem:[#allocation2] sm:$0x1] %v177_v7 }
 0x130   :  { %v389_v8 = vld [vmem:[#allocation2] ss:$0 sm:$0xff] }
 0x184   :  { %v328_v9 = vpop.f32.mrb[0].mxu1 }
 0x185   :  { %v339_v10 = vmul.f32 %v389_v8, %v328_v9  ;;  %v493_v0 = vpop.f32.mrb[1].mxu1 }
 0x187   :  { %340 = vst [vmem:[#allocation3] sm:$0xff] %v339_v10 }
 0x188   :  { %580 = shalt.err (!%p577_p4)
}
 0x189   :  { %s581_s22 = scalar_lea.hbm %s749_s3, 128 }
 0x18a   :  { %p582_p5 = scmp.ne.s32.totalorder %s749_s3, %s581_s22  ;;  %p585_p6 = scmp.lt.u32.totalorder %s581_s22, %s749_s3 }
 0x18c   :  { %p587_p7 = pnand %p585_p6, %p582_p5 }
 0x18e   :  { %590 = shalt.err (!%p587_p7)
}
 0x18f   :  { %350 = dma.vmem_to_hbm [thread:$0]  %s348_s19, 128, %s749_s3, [#allocation4]  }
 0x190   :  { %591 = dma.done.wait [#allocation4], 128  }
 0x191   :  { %592 = vsyncadd [#allocation4], 4294967168 }
 0x192   :  { %354 = vsyncpa [#allocation4], 1 }

</bundles_post_ra>
